<compile_context>
chip_gen: v7x
topology: tpu7x:2x2x1
jax: 0.10.0
libtpu: 0.0.40
codegen_flags: <defaults>
</compile_context>

<pallas_src>
import numpy as np
import jax
import jax.numpy as jnp
from jax import lax
from jax.experimental import pallas as pl
from jax.experimental.pallas import tpu as pltpu


def _round_up(x, m):
    return -(-x // m) * m


def _sel_right(n_in, n_out, k, stride, pad):
    """(K, n_in, n_out) 0/1 selector: out[o] = in[stride*o + kk - pad] (0 if OOB)."""
    m = np.zeros((k, n_in, n_out), np.float32)
    for kk in range(k):
        for o in range(n_out):
            i = stride * o + kk - pad
            if 0 <= i < n_in:
                m[kk, i, o] = 1.0
    return m


_HALO = 8  # sublane-aligned top halo of the conv2 staging scratch


def _make_kernel(T1P, T2, CF1, CF2, RY):
    def _silu(v):
        # stable sigmoid: clamp keeps exp finite so the approx reciprocal never
        # sees inf; exp and vrcp both land on the (otherwise idle) EUP slot.
        e = jnp.exp(-jnp.maximum(v, -60.0))
        return v * pl.reciprocal(1.0 + e, approx=True)

    def kernel(lens_ref,                                            # SMEM scalar prefetch
               xq_ref, w1_ref, sc1_ref, sh1_ref, w2_ref, cb2_ref,   # VMEM inputs
               wp_ref, bp_ref,
               o_ref,                                               # VMEM output
               ypad_ref):                                           # VMEM scratch
        b = pl.program_id(0)
        xlen = lens_ref[b]

        # ---- conv1: quad-phase tap fold -> 2 MXU dots, contraction 4*D each ----
        xq = xq_ref[...].astype(jnp.float32)          # aligned bf16 load, unpack once
        p0 = xq[0:T1P, :].astype(jnp.bfloat16)        # row j   -> x[4j .. 4j+3]
        p1 = xq[1:T1P + 1, :].astype(jnp.bfloat16)    # row j+1 -> x[4j+4 .. 4j+7]
        h1 = (jnp.dot(p0, w1_ref[0], preferred_element_type=jnp.float32)
              + jnp.dot(p1, w1_ref[1], preferred_element_type=jnp.float32))  # (T1P, 2*CF1)

        # folded conv1 bias + eval-mode BatchNorm, SiLU, subsampled time mask.
        # Column block 0 of a pair is conv1 row 2j (time 4j), block 1 is row 2j+1.
        y = _silu(h1 * sc1_ref[...] + sh1_ref[...])
        jr = lax.broadcasted_iota(jnp.int32, (T1P, 2 * CF1), 0)
        cc = lax.broadcasted_iota(jnp.int32, (T1P, 2 * CF1), 1)
        tpos = 4 * jr + jnp.where(cc < CF1, 0, 2)
        y = y * (tpos < xlen).astype(jnp.float32)

        # ---- stage paired conv1 rows; zero only the halo rows (never the full
        # scratch); interior store is at a sublane-aligned offset of 8.
        ypad_ref[pl.ds(0, _HALO), :] = jnp.zeros((_HALO, 2 * CF1), jnp.float32)
        ypad_ref[pl.ds(_HALO + T1P, RY - _HALO - T1P), :] = jnp.zeros(
            (RY - _HALO - T1P, 2 * CF1), jnp.float32)
        ypad_ref[pl.ds(_HALO, T1P), :] = y

        # ---- depthwise conv2: pair fold -> 3 dots, contraction 2*CF1 each ----
        la = ypad_ref[pl.ds(_HALO - 1, T2), :].astype(jnp.bfloat16)   # pair t2-1 (taps 0,1)
        lb = ypad_ref[pl.ds(_HALO, T2), :].astype(jnp.bfloat16)       # pair t2   (taps 2,3)
        lc = ypad_ref[pl.ds(_HALO + 1, T2), :].astype(jnp.bfloat16)   # pair t2+1 (tap 4)
        h2 = (jnp.dot(la, w2_ref[0], preferred_element_type=jnp.float32)
              + jnp.dot(lb, w2_ref[1], preferred_element_type=jnp.float32)
              + jnp.dot(lc, w2_ref[2], preferred_element_type=jnp.float32)
              + cb2_ref[...])
        z = _silu(h2)
        t2_ids = lax.broadcasted_iota(jnp.int32, (T2, 1), 0)
        z = z * (4 * t2_ids < xlen).astype(jnp.float32)

        # ---- channel-major flatten + Linear: one lane-dense matmul + bias ----
        o_ref[...] = (jnp.dot(z.astype(jnp.bfloat16), wp_ref[...],
                              preferred_element_type=jnp.float32) + bp_ref[...])

    return kernel


def conv_subsampling_forward(xs, x_lens, params):
    """xs: (B, T, D) f32, x_lens: (B,) int. Returns ((B, T2, N) f32, (B,) int32)."""
    (w1, cb1, gamma, beta, rmean, rvar, w2, cb2, wp, bp) = params
    B, T, D = xs.shape
    C, _, K, _ = w1.shape
    N = wp.shape[0]
    stride, pad, eps = 2, (K - 1) // 2, 1e-5
    assert K == 5 and stride == 2 and pad == 2  # tap folding derived for the module defaults

    T1 = (T + 2 * pad - K) // stride + 1
    F1 = (D + 2 * pad - K) // stride + 1
    T2 = (T1 + 2 * pad - K) // stride + 1
    F2 = (F1 + 2 * pad - K) // stride + 1
    CF1, CF2 = C * F1, C * F2
    T1P = (T1 + 1) // 2                      # conv1 rows are produced in pairs
    assert T2 == T1P
    Npad = _round_up(N, 128)                 # lane-dense output stores
    assert wp.shape[1] == CF2
    RY = _HALO + _round_up(T1P + 1, 8)       # scratch rows (aligned halo + interior + tail)

    # --- glue: bf16 input, time-pad, then a free "quad" reshape (4 time rows/lane-row)
    Rp = 4 * (T1P + 1)
    xp = jnp.pad(xs.astype(jnp.bfloat16), ((0, 0), (pad, Rp - pad - T), (0, 0)))
    xq = xp.reshape(B, T1P + 1, 4 * D)

    # --- glue: fold freq-tap selection + conv weights, then fold the 5 time taps.
    s1 = jnp.asarray(_sel_right(D, F1, K, stride, pad))      # (K, D, F1) 0/1
    s2 = jnp.asarray(_sel_right(F1, F2, K, stride, pad))     # (K, F1, F2) 0/1
    w1tap = jnp.einsum('wdf,cohw->hdcf', s1, w1).reshape(K, D, CF1)
    zD = jnp.zeros((D, CF1), jnp.float32)
    # y[2j]   = sum_kh x[4j+kh]   . tap[kh];  y[2j+1] = sum_kh x[4j+2+kh] . tap[kh]
    w1a = jnp.concatenate(
        [jnp.concatenate([w1tap[0], w1tap[1], w1tap[2], w1tap[3]], axis=0),
         jnp.concatenate([zD, zD, w1tap[0], w1tap[1]], axis=0)], axis=1)
    w1b = jnp.concatenate(
        [jnp.concatenate([w1tap[4], zD, zD, zD], axis=0),
         jnp.concatenate([w1tap[2], w1tap[3], w1tap[4], zD], axis=0)], axis=1)
    w1ab = jnp.stack([w1a, w1b]).astype(jnp.bfloat16)        # (2, 4*D, 2*CF1)

    # depthwise conv2: block-diagonal per-tap weights, folded pairwise (0/1, 2/3, 4).
    # TODO(synk): for large num_filters the block-diagonal form wastes a factor C;
    # switch to per-channel (F1,F2) matmuls there.
    t2w = jnp.einsum('wgf,cohw->hcgf', s2, w2)               # (K, C, F1, F2)
    eye = jnp.eye(C, dtype=jnp.float32)
    w2sel = (t2w[:, :, :, None, :] * eye[None, :, None, :, None]).reshape(K, CF1, CF2)
    w2a = jnp.concatenate([w2sel[0], w2sel[1]], axis=0)
    w2b = jnp.concatenate([w2sel[2], w2sel[3]], axis=0)
    w2c = jnp.concatenate([w2sel[4], jnp.zeros((CF1, CF2), jnp.float32)], axis=0)
    w2abc = jnp.stack([w2a, w2b, w2c]).astype(jnp.bfloat16)  # (3, 2*CF1, CF2)

    # --- glue: conv1 bias + eval-mode BN folded to scale/shift rows (paired layout)
    bn_scale = gamma / jnp.sqrt(rvar + eps)
    sc1 = jnp.repeat(bn_scale, F1).reshape(1, CF1)
    sh1 = jnp.repeat((cb1 - rmean) * bn_scale + beta, F1).reshape(1, CF1)
    sc1p = jnp.concatenate([sc1, sc1], axis=1)               # (1, 2*CF1)
    sh1p = jnp.concatenate([sh1, sh1], axis=1)
    cb2r = jnp.repeat(cb2, F2).reshape(1, CF2)

    # --- glue: projection weight in channel-major row order, lane-padded output
    wp_cm = jnp.pad(wp.T, ((0, 0), (0, Npad - N))).astype(jnp.bfloat16)   # (CF2, Npad)
    bp_r = jnp.pad(bp, (0, Npad - N)).reshape(1, Npad)
    lens32 = x_lens.astype(jnp.int32)

    # advisory cost + explicit VMEM budget (review items)
    flops = 2 * B * (2 * T1P * (4 * D) * (2 * CF1)
                     + 3 * T2 * (2 * CF1) * CF2
                     + T2 * CF2 * Npad)
    transcendentals = B * (T1P * 2 * CF1 + T2 * CF2)
    bytes_accessed = int(xq.size * 2 + w1ab.size * 2 + w2abc.size * 2 + wp_cm.size * 2
                         + (sc1p.size + sh1p.size + cb2r.size + bp_r.size) * 4
                         + B * T2 * Npad * 4 + B * 4)

    def _tile_bytes(shape, itemsize):
        lead = int(np.prod(shape[:-2])) if len(shape) > 2 else 1
        return lead * _round_up(shape[-2], 8) * _round_up(shape[-1], 128) * itemsize

    vmem_need = (2 * _tile_bytes((T1P + 1, 4 * D), 2)            # xq (bf16, double-buffered)
                 + 2 * _tile_bytes((2, 4 * D, 2 * CF1), 2)
                 + 2 * _tile_bytes((3, 2 * CF1, CF2), 2)
                 + 2 * _tile_bytes((CF2, Npad), 2)
                 + 2 * (2 * _tile_bytes((1, 2 * CF1), 4)
                        + _tile_bytes((1, CF2), 4) + _tile_bytes((1, Npad), 4))
                 + 2 * _tile_bytes((T2, Npad), 4)                 # output (double-buffered)
                 + _tile_bytes((RY, 2 * CF1), 4))                 # scratch
    vmem_limit = int(min(max(2 * vmem_need + (4 << 20), 32 << 20), 64 << 20))

    grid_spec = pltpu.PrefetchScalarGridSpec(
        num_scalar_prefetch=1,
        grid=(B,),
        in_specs=[
            pl.BlockSpec((None, T1P + 1, 4 * D), lambda b, lens: (b, 0, 0)),   # xq
            pl.BlockSpec((2, 4 * D, 2 * CF1), lambda b, lens: (0, 0, 0)),      # w1ab
            pl.BlockSpec((1, 2 * CF1), lambda b, lens: (0, 0)),                # sc1p
            pl.BlockSpec((1, 2 * CF1), lambda b, lens: (0, 0)),                # sh1p
            pl.BlockSpec((3, 2 * CF1, CF2), lambda b, lens: (0, 0, 0)),        # w2abc
            pl.BlockSpec((1, CF2), lambda b, lens: (0, 0)),                    # cb2r
            pl.BlockSpec((CF2, Npad), lambda b, lens: (0, 0)),                 # wp_cm
            pl.BlockSpec((1, Npad), lambda b, lens: (0, 0)),                   # bp_r
        ],
        out_specs=pl.BlockSpec((None, T2, Npad), lambda b, lens: (b, 0, 0)),
        scratch_shapes=[pltpu.VMEM((RY, 2 * CF1), jnp.float32)],
    )

    out_pad = pl.pallas_call(
        _make_kernel(T1P, T2, CF1, CF2, RY),
        grid_spec=grid_spec,
        out_shape=jax.ShapeDtypeStruct((B, T2, Npad), jnp.float32),
        compiler_params=pltpu.CompilerParams(
            dimension_semantics=("parallel",),
            vmem_limit_bytes=vmem_limit),
        cost_estimate=pl.CostEstimate(flops=flops, transcendentals=transcendentals,
                                      bytes_accessed=bytes_accessed),
    )(lens32, xq, w1ab, sc1p, sh1p, w2abc, cb2r, wp_cm, bp_r)

    # TODO(synk): keep the Npad-padded (or bf16) output if downstream accepts it.
    out = out_pad[..., :N]
    out_lens = (x_lens - 1) // 4 + 1
    return out, out_lens


def _reference(xs, x_lens, params):
    """Pure-JAX reference mirroring the PyTorch forward (eval mode)."""
    (w1, cb1, gamma, beta, rmean, rvar, w2, cb2, wp, bp) = params
    B, T, D = xs.shape
    C = w1.shape[0]
    x4 = xs[:, None, :, :]
    mask = (jnp.arange(T)[None, :] < x_lens[:, None]).astype(xs.dtype)
    m1 = mask[:, ::2]
    m2 = m1[:, ::2]
    h = lax.conv_general_dilated(x4, w1, (2, 2), [(2, 2), (2, 2)],
                                 dimension_numbers=("NCHW", "OIHW", "NCHW"))
    h = h + cb1[None, :, None, None]
    h = ((h - rmean[None, :, None, None]) / jnp.sqrt(rvar[None, :, None, None] + 1e-5)
         * gamma[None, :, None, None] + beta[None, :, None, None])
    h = h * jax.nn.sigmoid(h)
    h = h * m1[:, None, :, None]
    g = lax.conv_general_dilated(h, w2, (2, 2), [(2, 2), (2, 2)],
                                 dimension_numbers=("NCHW", "OIHW", "NCHW"),
                                 feature_group_count=C)
    g = g + cb2[None, :, None, None]
    g = g * jax.nn.sigmoid(g)
    g = g * m2[:, None, :, None]
    b_, c_, t_, f_ = g.shape
    feat = jnp.transpose(g, (0, 2, 1, 3)).reshape(b_, t_, c_ * f_)
    out = feat @ wp.T + bp
    lens = (x_lens - 1) // 4 + 1
    return out, lens


if __name__ == "__main__":
    key = jax.random.PRNGKey(0)
    B, T, D = 2, 16, 16            # batch, time, input_dim
    C, K, N = 4, 5, 32             # num_filters, kernel_size, output_dim
    in_feat = C * ((D + 3) // 4)   # num_filters * ceil(input_dim / 4)

    ks = jax.random.split(key, 11)
    xs = jax.random.normal(ks[0], (B, T, D), jnp.float32)
    x_lens = jnp.array([16, 11], dtype=jnp.int32)

    w1 = 0.1 * jax.random.normal(ks[1], (C, 1, K, K), jnp.float32)
    cb1 = 0.1 * jax.random.normal(ks[2], (C,), jnp.float32)
    gamma = 1.0 + 0.1 * jax.random.normal(ks[3], (C,), jnp.float32)
    beta = 0.1 * jax.random.normal(ks[4], (C,), jnp.float32)
    rmean = 0.1 * jax.random.normal(ks[5], (C,), jnp.float32)
    rvar = jax.random.uniform(ks[6], (C,), jnp.float32, 0.5, 1.5)
    w2 = 0.1 * jax.random.normal(ks[7], (C, 1, K, K), jnp.float32)
    cb2 = 0.1 * jax.random.normal(ks[8], (C,), jnp.float32)
    wp = 0.1 * jax.random.normal(ks[9], (N, in_feat), jnp.float32)
    bp = 0.1 * jax.random.normal(ks[10], (N,), jnp.float32)
    params = (w1, cb1, gamma, beta, rmean, rvar, w2, cb2, wp, bp)

    fwd = jax.jit(conv_subsampling_forward)
    out, out_lens = fwd(xs, x_lens, params)
    out = jax.block_until_ready(out)
    out_lens = jax.block_until_ready(out_lens)

    # Reference fed the same bf16-rounded MXU operands (weights / input); the
    # residual delta is bf16 activation rounding + the approx-reciprocal sigmoid.
    rt = lambda a: a.astype(jnp.bfloat16).astype(jnp.float32)
    ref_params = (rt(w1), cb1, gamma, beta, rmean, rvar, rt(w2), cb2, rt(wp), bp)
    ref_out, ref_lens = _reference(rt(xs), x_lens, ref_params)

    assert out.shape == ref_out.shape, (out.shape, ref_out.shape)
    max_err = float(jnp.max(jnp.abs(out - ref_out)))
    assert jnp.allclose(out, ref_out, atol=2e-2, rtol=2e-2), f"max_err={max_err}"
    assert jnp.array_equal(out_lens, ref_lens), (out_lens, ref_lens)
    print("KERNEL_OK")
</pallas_src>

<mosaic_0001>
module attributes {stable_mosaic.version = 11 : i64} {
  func.func @kernel(%arg0: i32, %arg1: memref<2xi32, #tpu.memory_space<smem>>, %arg2: memref<1x5x64xbf16, #tpu.memory_space<vmem>>, %arg3: memref<2x64x64xbf16, #tpu.memory_space<vmem>>, %arg4: memref<1x64xf32, #tpu.memory_space<vmem>>, %arg5: memref<1x64xf32, #tpu.memory_space<vmem>>, %arg6: memref<3x64x16xbf16, #tpu.memory_space<vmem>>, %arg7: memref<1x16xf32, #tpu.memory_space<vmem>>, %arg8: memref<16x128xbf16, #tpu.memory_space<vmem>>, %arg9: memref<1x128xf32, #tpu.memory_space<vmem>>, %arg10: memref<1x4x128xf32, #tpu.memory_space<vmem>>, %arg11: memref<16x64xf32, #tpu.memory_space<vmem>>) attributes {dimension_semantics = [#tpu.dimension_semantics<parallel>], iteration_bounds = array<i64: 2>, scalar_prefetch = 1 : i64, scratch_operands = 1 : i64, tpu.core_type = #tpu.core_type<tc>, window_params = [{transform_indices = @transform_0, window_bounds = array<i64: 1, 5, 64>}, {pipeline_mode = #tpu.pipeline_mode<synchronous>, transform_indices = @transform_1, window_bounds = array<i64: 2, 64, 64>}, {pipeline_mode = #tpu.pipeline_mode<synchronous>, transform_indices = @transform_2, window_bounds = array<i64: 1, 64>}, {pipeline_mode = #tpu.pipeline_mode<synchronous>, transform_indices = @transform_3, window_bounds = array<i64: 1, 64>}, {pipeline_mode = #tpu.pipeline_mode<synchronous>, transform_indices = @transform_4, window_bounds = array<i64: 3, 64, 16>}, {pipeline_mode = #tpu.pipeline_mode<synchronous>, transform_indices = @transform_5, window_bounds = array<i64: 1, 16>}, {pipeline_mode = #tpu.pipeline_mode<synchronous>, transform_indices = @transform_6, window_bounds = array<i64: 16, 128>}, {pipeline_mode = #tpu.pipeline_mode<synchronous>, transform_indices = @transform_7, window_bounds = array<i64: 1, 128>}, {transform_indices = @transform_8, window_bounds = array<i64: 1, 4, 128>}]} {
    %0 = arith.index_cast %arg0 : i32 to index
    %1 = memref.load %arg1[%0] : memref<2xi32, #tpu.memory_space<smem>>
    %c0 = arith.constant 0 : index
    %c0_0 = arith.constant 0 : index
    %c0_1 = arith.constant 0 : index
    %2 = vector.load %arg2[%c0, %c0_0, %c0_1] : memref<1x5x64xbf16, #tpu.memory_space<vmem>>, vector<1x5x64xbf16>
    %3 = vector.shape_cast %2 : vector<1x5x64xbf16> to vector<5x64xbf16>
    %4 = arith.extf %3 : vector<5x64xbf16> to vector<5x64xf32>
    %5 = vector.extract_strided_slice %4 {offsets = [0, 0], sizes = [4, 64], strides = [1, 1]} : vector<5x64xf32> to vector<4x64xf32>
    %6 = arith.truncf %5 : vector<4x64xf32> to vector<4x64xbf16>
    %7 = vector.extract_strided_slice %4 {offsets = [1, 0], sizes = [4, 64], strides = [1, 1]} : vector<5x64xf32> to vector<4x64xf32>
    %8 = arith.truncf %7 : vector<4x64xf32> to vector<4x64xbf16>
    %c0_2 = arith.constant 0 : index
    %c0_3 = arith.constant 0 : index
    %c0_4 = arith.constant 0 : index
    %9 = vector.load %arg3[%c0_2, %c0_3, %c0_4] : memref<2x64x64xbf16, #tpu.memory_space<vmem>>, vector<1x64x64xbf16>
    %10 = vector.shape_cast %9 : vector<1x64x64xbf16> to vector<64x64xbf16>
    %cst = arith.constant dense<0.000000e+00> : vector<4x64xf32>
    %11 = tpu.matmul %6, %10, %cst {dimension_numbers = #tpu.dot_dimension_numbers<[1], [0], [0], [1], [0, 0, 1, 1], [], []>} : vector<4x64xbf16>, vector<64x64xbf16>, vector<4x64xf32> -> vector<4x64xf32>
    %c1 = arith.constant 1 : index
    %c0_5 = arith.constant 0 : index
    %c0_6 = arith.constant 0 : index
    %12 = vector.load %arg3[%c1, %c0_5, %c0_6] : memref<2x64x64xbf16, #tpu.memory_space<vmem>>, vector<1x64x64xbf16>
    %13 = vector.shape_cast %12 : vector<1x64x64xbf16> to vector<64x64xbf16>
    %cst_7 = arith.constant dense<0.000000e+00> : vector<4x64xf32>
    %14 = tpu.matmul %8, %13, %cst_7 {dimension_numbers = #tpu.dot_dimension_numbers<[1], [0], [0], [1], [0, 0, 1, 1], [], []>} : vector<4x64xbf16>, vector<64x64xbf16>, vector<4x64xf32> -> vector<4x64xf32>
    %15 = arith.addf %11, %14 : vector<4x64xf32>
    %c0_8 = arith.constant 0 : index
    %c0_9 = arith.constant 0 : index
    %16 = vector.load %arg4[%c0_8, %c0_9] : memref<1x64xf32, #tpu.memory_space<vmem>>, vector<1x64xf32>
    %17 = vector.broadcast %16 : vector<1x64xf32> to vector<4x64xf32>
    %18 = arith.mulf %15, %17 : vector<4x64xf32>
    %c0_10 = arith.constant 0 : index
    %c0_11 = arith.constant 0 : index
    %19 = vector.load %arg5[%c0_10, %c0_11] : memref<1x64xf32, #tpu.memory_space<vmem>>, vector<1x64xf32>
    %20 = vector.broadcast %19 : vector<1x64xf32> to vector<4x64xf32>
    %21 = arith.addf %18, %20 : vector<4x64xf32>
    %cst_12 = arith.constant -6.000000e+01 : f32
    %22 = vector.broadcast %cst_12 : f32 to vector<4x64xf32>
    %23 = arith.maximumf %21, %22 : vector<4x64xf32>
    %cst_13 = arith.constant 0.000000e+00 : f32
    %24 = vector.broadcast %cst_13 : f32 to vector<4x64xf32>
    %25 = arith.subf %24, %23 : vector<4x64xf32>
    %26 = math.exp %25 : vector<4x64xf32>
    %cst_14 = arith.constant 1.000000e+00 : f32
    %27 = vector.broadcast %cst_14 : f32 to vector<4x64xf32>
    %28 = arith.addf %27, %26 : vector<4x64xf32>
    %29 = tpu.reciprocal %28 {approx = true} : vector<4x64xf32> -> vector<4x64xf32>
    %30 = arith.mulf %21, %29 : vector<4x64xf32>
    %31 = tpu.iota {dimensions = array<i32: 0>} : vector<4x64xi32>
    %32 = tpu.iota {dimensions = array<i32: 1>} : vector<4x64xi32>
    %c4_i32 = arith.constant 4 : i32
    %33 = vector.broadcast %c4_i32 : i32 to vector<4x64xi32>
    %34 = arith.muli %33, %31 : vector<4x64xi32>
    %c32_i32 = arith.constant 32 : i32
    %35 = vector.broadcast %c32_i32 : i32 to vector<4x64xi32>
    %36 = arith.cmpi slt, %32, %35 : vector<4x64xi32>
    %c0_i32 = arith.constant 0 : i32
    %c2_i32 = arith.constant 2 : i32
    %37 = vector.broadcast %c0_i32 : i32 to vector<4x64xi32>
    %38 = vector.broadcast %c2_i32 : i32 to vector<4x64xi32>
    %39 = arith.select %36, %37, %38 : vector<4x64xi1>, vector<4x64xi32>
    %40 = arith.addi %34, %39 : vector<4x64xi32>
    %41 = vector.broadcast %1 : i32 to vector<4x64xi32>
    %42 = arith.cmpi slt, %40, %41 : vector<4x64xi32>
    %43 = arith.extui %42 : vector<4x64xi1> to vector<4x64xi32>
    %44 = arith.sitofp %43 : vector<4x64xi32> to vector<4x64xf32>
    %45 = arith.mulf %30, %44 : vector<4x64xf32>
    %cst_15 = arith.constant 0.000000e+00 : f32
    %46 = vector.broadcast %cst_15 : f32 to vector<8x64xf32>
    %c0_16 = arith.constant 0 : index
    %c0_17 = arith.constant 0 : index
    %47 = vector.load %arg11[%c0_16, %c0_17] : memref<16x64xf32, #tpu.memory_space<vmem>>, vector<8x64xf32>
    tpu.vector_store %arg11[%c0_16, %c0_17], %46 {strides = array<i32>} : memref<16x64xf32, #tpu.memory_space<vmem>>, vector<8x64xf32>,
    %cst_18 = arith.constant 0.000000e+00 : f32
    %48 = vector.broadcast %cst_18 : f32 to vector<4x64xf32>
    %c12 = arith.constant 12 : index
    %c0_19 = arith.constant 0 : index
    %49 = vector.load %arg11[%c12, %c0_19] : memref<16x64xf32, #tpu.memory_space<vmem>>, vector<4x64xf32>
    tpu.vector_store %arg11[%c12, %c0_19], %48 {strides = array<i32>} : memref<16x64xf32, #tpu.memory_space<vmem>>, vector<4x64xf32>,
    %c8 = arith.constant 8 : index
    %c0_20 = arith.constant 0 : index
    %50 = vector.load %arg11[%c8, %c0_20] : memref<16x64xf32, #tpu.memory_space<vmem>>, vector<4x64xf32>
    tpu.vector_store %arg11[%c8, %c0_20], %45 {strides = array<i32>} : memref<16x64xf32, #tpu.memory_space<vmem>>, vector<4x64xf32>,
    %c7 = arith.constant 7 : index
    %c0_21 = arith.constant 0 : index
    %51 = vector.load %arg11[%c7, %c0_21] : memref<16x64xf32, #tpu.memory_space<vmem>>, vector<4x64xf32>
    %52 = arith.truncf %51 : vector<4x64xf32> to vector<4x64xbf16>
    %c8_22 = arith.constant 8 : index
    %c0_23 = arith.constant 0 : index
    %53 = vector.load %arg11[%c8_22, %c0_23] : memref<16x64xf32, #tpu.memory_space<vmem>>, vector<4x64xf32>
    %54 = arith.truncf %53 : vector<4x64xf32> to vector<4x64xbf16>
    %c9 = arith.constant 9 : index
    %c0_24 = arith.constant 0 : index
    %55 = vector.load %arg11[%c9, %c0_24] : memref<16x64xf32, #tpu.memory_space<vmem>>, vector<4x64xf32>
    %56 = arith.truncf %55 : vector<4x64xf32> to vector<4x64xbf16>
    %c0_25 = arith.constant 0 : index
    %c0_26 = arith.constant 0 : index
    %c0_27 = arith.constant 0 : index
    %57 = vector.load %arg6[%c0_25, %c0_26, %c0_27] : memref<3x64x16xbf16, #tpu.memory_space<vmem>>, vector<1x64x16xbf16>
    %58 = vector.shape_cast %57 : vector<1x64x16xbf16> to vector<64x16xbf16>
    %cst_28 = arith.constant dense<0.000000e+00> : vector<4x16xf32>
    %59 = tpu.matmul %52, %58, %cst_28 {dimension_numbers = #tpu.dot_dimension_numbers<[1], [0], [0], [1], [0, 0, 1, 1], [], []>} : vector<4x64xbf16>, vector<64x16xbf16>, vector<4x16xf32> -> vector<4x16xf32>
    %c1_29 = arith.constant 1 : index
    %c0_30 = arith.constant 0 : index
    %c0_31 = arith.constant 0 : index
    %60 = vector.load %arg6[%c1_29, %c0_30, %c0_31] : memref<3x64x16xbf16, #tpu.memory_space<vmem>>, vector<1x64x16xbf16>
    %61 = vector.shape_cast %60 : vector<1x64x16xbf16> to vector<64x16xbf16>
    %cst_32 = arith.constant dense<0.000000e+00> : vector<4x16xf32>
    %62 = tpu.matmul %54, %61, %cst_32 {dimension_numbers = #tpu.dot_dimension_numbers<[1], [0], [0], [1], [0, 0, 1, 1], [], []>} : vector<4x64xbf16>, vector<64x16xbf16>, vector<4x16xf32> -> vector<4x16xf32>
    %63 = arith.addf %59, %62 : vector<4x16xf32>
    %c2 = arith.constant 2 : index
    %c0_33 = arith.constant 0 : index
    %c0_34 = arith.constant 0 : index
    %64 = vector.load %arg6[%c2, %c0_33, %c0_34] : memref<3x64x16xbf16, #tpu.memory_space<vmem>>, vector<1x64x16xbf16>
    %65 = vector.shape_cast %64 : vector<1x64x16xbf16> to vector<64x16xbf16>
    %cst_35 = arith.constant dense<0.000000e+00> : vector<4x16xf32>
    %66 = tpu.matmul %56, %65, %cst_35 {dimension_numbers = #tpu.dot_dimension_numbers<[1], [0], [0], [1], [0, 0, 1, 1], [], []>} : vector<4x64xbf16>, vector<64x16xbf16>, vector<4x16xf32> -> vector<4x16xf32>
    %67 = arith.addf %63, %66 : vector<4x16xf32>
    %c0_36 = arith.constant 0 : index
    %c0_37 = arith.constant 0 : index
    %68 = vector.load %arg7[%c0_36, %c0_37] : memref<1x16xf32, #tpu.memory_space<vmem>>, vector<1x16xf32>
    %69 = vector.broadcast %68 : vector<1x16xf32> to vector<4x16xf32>
    %70 = arith.addf %67, %69 : vector<4x16xf32>
    %cst_38 = arith.constant -6.000000e+01 : f32
    %71 = vector.broadcast %cst_38 : f32 to vector<4x16xf32>
    %72 = arith.maximumf %70, %71 : vector<4x16xf32>
    %cst_39 = arith.constant 0.000000e+00 : f32
    %73 = vector.broadcast %cst_39 : f32 to vector<4x16xf32>
    %74 = arith.subf %73, %72 : vector<4x16xf32>
    %75 = math.exp %74 : vector<4x16xf32>
    %cst_40 = arith.constant 1.000000e+00 : f32
    %76 = vector.broadcast %cst_40 : f32 to vector<4x16xf32>
    %77 = arith.addf %76, %75 : vector<4x16xf32>
    %78 = tpu.reciprocal %77 {approx = true} : vector<4x16xf32> -> vector<4x16xf32>
    %79 = arith.mulf %70, %78 : vector<4x16xf32>
    %80 = tpu.iota {dimensions = array<i32: 0>} : vector<4x1xi32>
    %c4_i32_41 = arith.constant 4 : i32
    %81 = vector.broadcast %c4_i32_41 : i32 to vector<4x1xi32>
    %82 = arith.muli %81, %80 : vector<4x1xi32>
    %83 = vector.broadcast %1 : i32 to vector<4x1xi32>
    %84 = arith.cmpi slt, %82, %83 : vector<4x1xi32>
    %85 = arith.extui %84 : vector<4x1xi1> to vector<4x1xi32>
    %86 = arith.sitofp %85 : vector<4x1xi32> to vector<4x1xf32>
    %87 = vector.broadcast %86 : vector<4x1xf32> to vector<4x16xf32>
    %88 = arith.mulf %79, %87 : vector<4x16xf32>
    %89 = arith.truncf %88 : vector<4x16xf32> to vector<4x16xbf16>
    %c0_42 = arith.constant 0 : index
    %c0_43 = arith.constant 0 : index
    %90 = vector.load %arg8[%c0_42, %c0_43] : memref<16x128xbf16, #tpu.memory_space<vmem>>, vector<16x128xbf16>
    %cst_44 = arith.constant dense<0.000000e+00> : vector<4x128xf32>
    %91 = tpu.matmul %89, %90, %cst_44 {dimension_numbers = #tpu.dot_dimension_numbers<[1], [0], [0], [1], [0, 0, 1, 1], [], []>} : vector<4x16xbf16>, vector<16x128xbf16>, vector<4x128xf32> -> vector<4x128xf32>
    %c0_45 = arith.constant 0 : index
    %c0_46 = arith.constant 0 : index
    %92 = vector.load %arg9[%c0_45, %c0_46] : memref<1x128xf32, #tpu.memory_space<vmem>>, vector<1x128xf32>
    %93 = vector.broadcast %92 : vector<1x128xf32> to vector<4x128xf32>
    %94 = arith.addf %91, %93 : vector<4x128xf32>
    %c0_47 = arith.constant 0 : index
    %c0_48 = arith.constant 0 : index
    %c0_49 = arith.constant 0 : index
    %95 = vector.load %arg10[%c0_47, %c0_48, %c0_49] : memref<1x4x128xf32, #tpu.memory_space<vmem>>, vector<1x4x128xf32>
    %96 = vector.shape_cast %95 : vector<1x4x128xf32> to vector<4x128xf32>
    %97 = vector.shape_cast %94 : vector<4x128xf32> to vector<1x4x128xf32>
    tpu.vector_store %arg10[%c0_47, %c0_48, %c0_49], %97 {strides = array<i32>} : memref<1x4x128xf32, #tpu.memory_space<vmem>>, vector<1x4x128xf32>,
    return
  }
  func.func @transform_0(%arg0: i32, %arg1: memref<2xi32, #tpu.memory_space<smem>>) -> (i32, i32, i32) {
    %c0_i32 = arith.constant 0 : i32
    %c0_i32_0 = arith.constant 0 : i32
    %c0_i32_1 = arith.constant 0 : i32
    return %arg0, %c0_i32, %c0_i32_0 : i32, i32, i32
  }
  func.func @transform_1(%arg0: i32, %arg1: memref<2xi32, #tpu.memory_space<smem>>) -> (i32, i32, i32) {
    %c0_i32 = arith.constant 0 : i32
    %c0_i32_0 = arith.constant 0 : i32
    %c0_i32_1 = arith.constant 0 : i32
    %c0_i32_2 = arith.constant 0 : i32
    return %c0_i32, %c0_i32_0, %c0_i32_1 : i32, i32, i32
  }
  func.func @transform_2(%arg0: i32, %arg1: memref<2xi32, #tpu.memory_space<smem>>) -> (i32, i32) {
    %c0_i32 = arith.constant 0 : i32
    %c0_i32_0 = arith.constant 0 : i32
    %c0_i32_1 = arith.constant 0 : i32
    return %c0_i32, %c0_i32_0 : i32, i32
  }
  func.func @transform_3(%arg0: i32, %arg1: memref<2xi32, #tpu.memory_space<smem>>) -> (i32, i32) {
    %c0_i32 = arith.constant 0 : i32
    %c0_i32_0 = arith.constant 0 : i32
    %c0_i32_1 = arith.constant 0 : i32
    return %c0_i32, %c0_i32_0 : i32, i32
  }
  func.func @transform_4(%arg0: i32, %arg1: memref<2xi32, #tpu.memory_space<smem>>) -> (i32, i32, i32) {
    %c0_i32 = arith.constant 0 : i32
    %c0_i32_0 = arith.constant 0 : i32
    %c0_i32_1 = arith.constant 0 : i32
    %c0_i32_2 = arith.constant 0 : i32
    return %c0_i32, %c0_i32_0, %c0_i32_1 : i32, i32, i32
  }
  func.func @transform_5(%arg0: i32, %arg1: memref<2xi32, #tpu.memory_space<smem>>) -> (i32, i32) {
    %c0_i32 = arith.constant 0 : i32
    %c0_i32_0 = arith.constant 0 : i32
    %c0_i32_1 = arith.constant 0 : i32
    return %c0_i32, %c0_i32_0 : i32, i32
  }
  func.func @transform_6(%arg0: i32, %arg1: memref<2xi32, #tpu.memory_space<smem>>) -> (i32, i32) {
    %c0_i32 = arith.constant 0 : i32
    %c0_i32_0 = arith.constant 0 : i32
    %c0_i32_1 = arith.constant 0 : i32
    return %c0_i32, %c0_i32_0 : i32, i32
  }
  func.func @transform_7(%arg0: i32, %arg1: memref<2xi32, #tpu.memory_space<smem>>) -> (i32, i32) {
    %c0_i32 = arith.constant 0 : i32
    %c0_i32_0 = arith.constant 0 : i32
    %c0_i32_1 = arith.constant 0 : i32
    return %c0_i32, %c0_i32_0 : i32, i32
  }
  func.func @transform_8(%arg0: i32, %arg1: memref<2xi32, #tpu.memory_space<smem>>) -> (i32, i32, i32) {
    %c0_i32 = arith.constant 0 : i32
    %c0_i32_0 = arith.constant 0 : i32
    %c0_i32_1 = arith.constant 0 : i32
    return %arg0, %c0_i32, %c0_i32_0 : i32, i32, i32
  }
}

</mosaic_0001>

<bundles_post_ra>
// kernel: mul.10
= control target key start
LH: loop header
LB: loop body
LE: loop exit
PB: predicated region body
PF: predicated region fallthrough
CT: control target
= control target key end

     0   :  { %s610_s0 = inlined_call_operand.vmem [shape: f32[5,4,8,4], index: 0, kind: input, shape index: {}]   ;;  %s611_s1 = inlined_call_operand.vmem [shape: f32[5,4,8,4,4], index: 1, kind: output, shape index: {}]  }
   0x1   :  { %v4_v0 = vld [vmem:[%s610_s0] sm:$0xf]  ;;  %v202_v1 = vld [vmem:[%s610_s0 + $0x10] sm:$0xf]  ;;  %v225_v5 = vld [vmem:[%s610_s0 + $0x4] sm:$0xf] }
   0x2   :  { %v204_v2 = vld [vmem:[%s610_s0 + $0x20] sm:$0xf]  ;;  %5 = vst [vmem:[%s611_s1] sm:$0xf] %v4_v0  ;;  %203 = vst [vmem:[%s611_s1 + $0x40] sm:$0xf] %v202_v1 }
   0x3   :  { %205 = vst [vmem:[%s611_s1 + $0x80] sm:$0xf] %v204_v2  ;;  %v206_v3 = vld [vmem:[%s610_s0 + $0x30] sm:$0xf]  ;;  %v208_v4 = vld [vmem:[%s610_s0 + $0x40] sm:$0xf] }
   0x4   :  { %210 = vst [vmem:[%s611_s1 + $0x10] sm:$0xf] %v4_v0  ;;  %211 = vst [vmem:[%s611_s1 + $0x50] sm:$0xf] %v202_v1  ;;  %v227_v6 = vld [vmem:[%s610_s0 + $0x14] sm:$0xf] }
   0x5   :  { %212 = vst [vmem:[%s611_s1 + $0x90] sm:$0xf] %v204_v2  ;;  %215 = vst [vmem:[%s611_s1 + $0x20] sm:$0xf] %v4_v0  ;;  %v229_v7 = vld [vmem:[%s610_s0 + $0x24] sm:$0xf] }
   0x6   :  { %216 = vst [vmem:[%s611_s1 + $0x60] sm:$0xf] %v202_v1  ;;  %217 = vst [vmem:[%s611_s1 + $0xa0] sm:$0xf] %v204_v2  ;;  %v231_v8 = vld [vmem:[%s610_s0 + $0x34] sm:$0xf] }
   0x7   :  { %220 = vst [vmem:[%s611_s1 + $0x30] sm:$0xf] %v4_v0  ;;  %221 = vst [vmem:[%s611_s1 + $0x70] sm:$0xf] %v202_v1  ;;  %v233_v9 = vld [vmem:[%s610_s0 + $0x44] sm:$0xf] }
   0x8   :  { %222 = vst [vmem:[%s611_s1 + $0xb0] sm:$0xf] %v204_v2  ;;  %207 = vst [vmem:[%s611_s1 + $0xc0] sm:$0xf] %v206_v3  ;;  %v250_v10 = vld [vmem:[%s610_s0 + $0x8] sm:$0xf] }
   0x9   :  { %209 = vst [vmem:[%s611_s1 + $0x100] sm:$0xf] %v208_v4  ;;  %213 = vst [vmem:[%s611_s1 + $0xd0] sm:$0xf] %v206_v3  ;;  %v252_v11 = vld [vmem:[%s610_s0 + $0x18] sm:$0xf] }
   0xa   :  { %214 = vst [vmem:[%s611_s1 + $0x110] sm:$0xf] %v208_v4  ;;  %218 = vst [vmem:[%s611_s1 + $0xe0] sm:$0xf] %v206_v3  ;;  %v254_v12 = vld [vmem:[%s610_s0 + $0x28] sm:$0xf] }
   0xb   :  { %219 = vst [vmem:[%s611_s1 + $0x120] sm:$0xf] %v208_v4  ;;  %223 = vst [vmem:[%s611_s1 + $0xf0] sm:$0xf] %v206_v3  ;;  %v256_v13 = vld [vmem:[%s610_s0 + $0x38] sm:$0xf] }
   0xc   :  { %224 = vst [vmem:[%s611_s1 + $0x130] sm:$0xf] %v208_v4  ;;  %226 = vst [vmem:[%s611_s1 + $0x4] sm:$0xf] %v225_v5  ;;  %v258_v14 = vld [vmem:[%s610_s0 + $0x48] sm:$0xf] }
   0xd   :  { %235 = vst [vmem:[%s611_s1 + $0x14] sm:$0xf] %v225_v5  ;;  %240 = vst [vmem:[%s611_s1 + $0x24] sm:$0xf] %v225_v5  ;;  %v275_v15 = vld [vmem:[%s610_s0 + $0xc] sm:$0xf] }
   0xe   :  { %245 = vst [vmem:[%s611_s1 + $0x34] sm:$0xf] %v225_v5  ;;  %228 = vst [vmem:[%s611_s1 + $0x44] sm:$0xf] %v227_v6  ;;  %v277_v16 = vld [vmem:[%s610_s0 + $0x1c] sm:$0xf] }
   0xf   :  { %230 = vst [vmem:[%s611_s1 + $0x84] sm:$0xf] %v229_v7  ;;  %232 = vst [vmem:[%s611_s1 + $0xc4] sm:$0xf] %v231_v8  ;;  %v279_v17 = vld [vmem:[%s610_s0 + $0x2c] sm:$0xf] }
  0x10   :  { %236 = vst [vmem:[%s611_s1 + $0x54] sm:$0xf] %v227_v6  ;;  %237 = vst [vmem:[%s611_s1 + $0x94] sm:$0xf] %v229_v7  ;;  %v281_v18 = vld [vmem:[%s610_s0 + $0x3c] sm:$0xf] }
  0x11   :  { %238 = vst [vmem:[%s611_s1 + $0xd4] sm:$0xf] %v231_v8  ;;  %241 = vst [vmem:[%s611_s1 + $0x64] sm:$0xf] %v227_v6  ;;  %v283_v19 = vld [vmem:[%s610_s0 + $0x4c] sm:$0xf] }
  0x12   :  { %242 = vst [vmem:[%s611_s1 + $0xa4] sm:$0xf] %v229_v7  ;;  %243 = vst [vmem:[%s611_s1 + $0xe4] sm:$0xf] %v231_v8 }
  0x13   :  { %246 = vst [vmem:[%s611_s1 + $0x74] sm:$0xf] %v227_v6  ;;  %247 = vst [vmem:[%s611_s1 + $0xb4] sm:$0xf] %v229_v7 }
  0x14   :  { %248 = vst [vmem:[%s611_s1 + $0xf4] sm:$0xf] %v231_v8  ;;  %234 = vst [vmem:[%s611_s1 + $0x104] sm:$0xf] %v233_v9 }
  0x15   :  { %239 = vst [vmem:[%s611_s1 + $0x114] sm:$0xf] %v233_v9  ;;  %244 = vst [vmem:[%s611_s1 + $0x124] sm:$0xf] %v233_v9 }
  0x16   :  { %249 = vst [vmem:[%s611_s1 + $0x134] sm:$0xf] %v233_v9  ;;  %251 = vst [vmem:[%s611_s1 + $0x8] sm:$0xf] %v250_v10 }
  0x17   :  { %253 = vst [vmem:[%s611_s1 + $0x48] sm:$0xf] %v252_v11  ;;  %260 = vst [vmem:[%s611_s1 + $0x18] sm:$0xf] %v250_v10 }
  0x18   :  { %261 = vst [vmem:[%s611_s1 + $0x58] sm:$0xf] %v252_v11  ;;  %265 = vst [vmem:[%s611_s1 + $0x28] sm:$0xf] %v250_v10 }
  0x19   :  { %266 = vst [vmem:[%s611_s1 + $0x68] sm:$0xf] %v252_v11  ;;  %270 = vst [vmem:[%s611_s1 + $0x38] sm:$0xf] %v250_v10 }
  0x1a   :  { %271 = vst [vmem:[%s611_s1 + $0x78] sm:$0xf] %v252_v11  ;;  %255 = vst [vmem:[%s611_s1 + $0x88] sm:$0xf] %v254_v12 }
  0x1b   :  { %257 = vst [vmem:[%s611_s1 + $0xc8] sm:$0xf] %v256_v13  ;;  %259 = vst [vmem:[%s611_s1 + $0x108] sm:$0xf] %v258_v14 }
  0x1c   :  { %262 = vst [vmem:[%s611_s1 + $0x98] sm:$0xf] %v254_v12  ;;  %263 = vst [vmem:[%s611_s1 + $0xd8] sm:$0xf] %v256_v13 }
  0x1d   :  { %264 = vst [vmem:[%s611_s1 + $0x118] sm:$0xf] %v258_v14  ;;  %267 = vst [vmem:[%s611_s1 + $0xa8] sm:$0xf] %v254_v12 }
  0x1e   :  { %268 = vst [vmem:[%s611_s1 + $0xe8] sm:$0xf] %v256_v13  ;;  %269 = vst [vmem:[%s611_s1 + $0x128] sm:$0xf] %v258_v14 }
  0x1f   :  { %272 = vst [vmem:[%s611_s1 + $0xb8] sm:$0xf] %v254_v12  ;;  %273 = vst [vmem:[%s611_s1 + $0xf8] sm:$0xf] %v256_v13 }
  0x20   :  { %274 = vst [vmem:[%s611_s1 + $0x138] sm:$0xf] %v258_v14  ;;  %276 = vst [vmem:[%s611_s1 + $0xc] sm:$0xf] %v275_v15 }
  0x21   :  { %278 = vst [vmem:[%s611_s1 + $0x4c] sm:$0xf] %v277_v16  ;;  %280 = vst [vmem:[%s611_s1 + $0x8c] sm:$0xf] %v279_v17 }
  0x22   :  { %285 = vst [vmem:[%s611_s1 + $0x1c] sm:$0xf] %v275_v15  ;;  %286 = vst [vmem:[%s611_s1 + $0x5c] sm:$0xf] %v277_v16 }
  0x23   :  { %287 = vst [vmem:[%s611_s1 + $0x9c] sm:$0xf] %v279_v17  ;;  %290 = vst [vmem:[%s611_s1 + $0x2c] sm:$0xf] %v275_v15 }
  0x24   :  { %291 = vst [vmem:[%s611_s1 + $0x6c] sm:$0xf] %v277_v16  ;;  %292 = vst [vmem:[%s611_s1 + $0xac] sm:$0xf] %v279_v17 }
  0x25   :  { %295 = vst [vmem:[%s611_s1 + $0x3c] sm:$0xf] %v275_v15  ;;  %296 = vst [vmem:[%s611_s1 + $0x7c] sm:$0xf] %v277_v16 }
  0x26   :  { %297 = vst [vmem:[%s611_s1 + $0xbc] sm:$0xf] %v279_v17  ;;  %282 = vst [vmem:[%s611_s1 + $0xcc] sm:$0xf] %v281_v18 }
  0x27   :  { %284 = vst [vmem:[%s611_s1 + $0x10c] sm:$0xf] %v283_v19  ;;  %288 = vst [vmem:[%s611_s1 + $0xdc] sm:$0xf] %v281_v18 }
  0x28   :  { %289 = vst [vmem:[%s611_s1 + $0x11c] sm:$0xf] %v283_v19  ;;  %293 = vst [vmem:[%s611_s1 + $0xec] sm:$0xf] %v281_v18 }
  0x29   :  { %294 = vst [vmem:[%s611_s1 + $0x12c] sm:$0xf] %v283_v19  ;;  %298 = vst [vmem:[%s611_s1 + $0xfc] sm:$0xf] %v281_v18 }
  0x2a   :  { %299 = vst [vmem:[%s611_s1 + $0x13c] sm:$0xf] %v283_v19 }

// kernel: squeeze.4
= control target key start
LH: loop header
LB: loop body
LE: loop exit
PB: predicated region body
PF: predicated region fallthrough
CT: control target
= control target key end

     0   :  { %vm259_vm0 = vcmask 1047556   ;;  %vm261_vm1 = vcmask 64512   ;;  %s403_s14 = smov 8   ;;  %s404_s15 = smov 16   ;;  %vm280_vm2 = vcmask 261312   ;;  %vm301_vm3 = vcmask 195712   ;;  %s440_s0 = inlined_call_operand.vmem [shape: bf16[1,4,8,4,4], index: 0, kind: input, shape index: {}]   ;;  %s441_s1 = inlined_call_operand.vmem [shape: bf16[32,16], index: 1, kind: output, shape index: {}]  }
   0x1   :  { %v363_v0 = vld [vmem:[%s440_s0 + $0x18] sm:$0xff]   ;;  %v367_v1 = vld [vmem:[%s440_s0 + $0x10] sm:$0xff]   ;;  %v371_v2 = vld [vmem:[%s440_s0 + $0x8] sm:$0xff]   ;;  %vm322_vm4 = vcmask 130112  }
   0x2   :  { %v17_v3 = vunpack.c.h.bf16 %v363_v0  ;;  %v49_v4 = vunpack.c.l.bf16 %v363_v0  ;;  %v375_v5 = vld [vmem:[%s440_s0] sm:$0xff]   ;;  %v81_v6 = vunpack.c.h.bf16 %v367_v1  ;;  %v113_v7 = vunpack.c.l.bf16 %v367_v1  ;;  %s402_s0 = smov 24  }
   0x3   :  { %v145_v8 = vunpack.c.h.bf16 %v371_v2  ;;  %v177_v9 = vunpack.c.l.bf16 %v371_v2  ;;  %v209_v10 = vunpack.c.h.bf16 %v375_v5  ;;  %v240_v11 = vunpack.c.l.bf16 %v375_v5 }
   0x4   :  { %20 = vst [vmem:[#allocation1 + $0x70] ss:$8 sps:$4 sm:$0xff] %v17_v3   ;;  %52 = vst [vmem:[#allocation1 + $0x60] ss:$8 sps:$4 sm:$0xff] %v49_v4  }
   0x5   :  { %84 = vst [vmem:[#allocation1 + $0x50] ss:$8 sps:$4 sm:$0xff] %v81_v6   ;;  %116 = vst [vmem:[#allocation1 + $0x40] ss:$8 sps:$4 sm:$0xff] %v113_v7  }
   0x6   :  { %148 = vst [vmem:[#allocation1 + $0x30] ss:$8 sps:$4 sm:$0xff] %v145_v8   ;;  %180 = vst [vmem:[#allocation1 + $0x20] ss:$8 sps:$4 sm:$0xff] %v177_v9  }
   0x7   :  { %212 = vst [vmem:[#allocation1 + $0x10] ss:$8 sps:$4 sm:$0xff] %v209_v10   ;;  %243 = vst [vmem:[#allocation1] ss:$8 sps:$4 sm:$0xff] %v240_v11  }
   0xb   :  { %v285_v12 = vld [vmem:[#allocation1 + $0x43] ss:$8 sm:$0xf0]   ;;  %v306_v13 = vld [vmem:[#allocation1 + $0x42] ss:$8 sm:$0xf0]  }
   0xc   :  { %v283_v14 = vld [vmem:[#allocation1 + $0x43] ss:$8 sm:$0xf]   ;;  %v304_v15 = vld [vmem:[#allocation1 + $0x42] ss:$8 sm:$0xf]  }
   0xd   :  { %v275_v16 = vld [vmem:[#allocation1 + $0x3] ss:$8 sm:$0xf0]   ;;  %v287_v17 = vsel %vm259_vm0, %v285_v12, %v283_v14  ;;  %v296_v18 = vld [vmem:[#allocation1 + $0x2] ss:$8 sm:$0xf0]   ;;  %v308_v23 = vsel %vm259_vm0, %v306_v13, %v304_v15 }
   0xe   :  { %v273_v19 = vld [vmem:[#allocation1 + $0x3] ss:$8 sm:$0xf]   ;;  %v294_v20 = vld [vmem:[#allocation1 + $0x2] ss:$8 sm:$0xf]  }
   0xf   :  { %v277_v21 = vsel %vm259_vm0, %v275_v16, %v273_v19  ;;  %v298_v22 = vsel %vm259_vm0, %v296_v18, %v294_v20  ;;  %v315_v24 = vld [vmem:[#allocation1 + $0x1] ss:$8 sm:$0xf]   ;;  %v257_v31 = vld [vmem:[#allocation1] ss:$8 sm:$0xf]  }
  0x10   :  { %v317_v25 = vld [vmem:[#allocation1 + $0x1] ss:$8 sm:$0xf0]   ;;  %v387_v26 = vpack.i.bf16 %v287_v17, %v277_v21  ;;  %v258_v32 = vld [vmem:[#allocation1] ss:$8 sm:$0xf0]   ;;  %v392_v33 = vpack.i.bf16 %v308_v23, %v298_v22 }
  0x11   :  { %v319_v27 = vsel %vm259_vm0, %v317_v25, %v315_v24  ;;  %v325_v28 = vld [vmem:[#allocation1 + $0x41] ss:$8 sm:$0xf]   ;;  %v260_v35 = vsel %vm259_vm0, %v258_v32, %v257_v31  ;;  %v264_v36 = vld [vmem:[#allocation1 + $0x40] ss:$8 sm:$0xf]  }
  0x12   :  { %v327_v29 = vld [vmem:[#allocation1 + $0x41] ss:$8 sm:$0xf0]   ;;  %388 = vrot.lane.b32.xlu0 %v387_v26, %s402_s0  ;;  %v266_v37 = vld [vmem:[#allocation1 + $0x40] ss:$8 sm:$0xf0]  }
  0x13   :  { %v329_v30 = vsel %vm259_vm0, %v327_v29, %v325_v28  ;;  %262 = vst.msk [vmem:[#allocation0] sm:$0xff] %vm261_vm1, %v260_v35   ;;  %v268_v38 = vsel %vm259_vm0, %v266_v37, %v264_v36 }
  0x14   :  { %v397_v34 = vpack.i.bf16 %v329_v30, %v319_v27  ;;  %271 = vst.msk [vmem:[#allocation0 + $0x8] sm:$0xff] %vm261_vm1, %v268_v38  }
  0x16   :  { %398 = vrot.lane.b32.xlu1 %v397_v34, %s403_s14  ;;  %393 = vrot.lane.b32.xlu0 %v392_v33, %s404_s15 }
  0x84   :  { %v389_v39 = vpop.permute.xlu0 %388 }
  0x85   :  { %v391_v40 = vunpack.i.h.bf16 %v389_v39  ;;  %v390_v41 = vunpack.i.l.bf16 %v389_v39 }
  0x87   :  { %281 = vst.msk [vmem:[#allocation0] sm:$0xff] %vm280_vm2, %v390_v41   ;;  %292 = vst.msk [vmem:[#allocation0 + $0x8] sm:$0xff] %vm280_vm2, %v391_v40  }
  0x88   :  { %v399_v42 = vpop.permute.xlu1 %398  ;;  %v394_v43 = vpop.permute.xlu0 %393 }
  0x89   :  { %v401_v44 = vunpack.i.h.bf16 %v399_v42  ;;  %v400_v45 = vunpack.i.l.bf16 %v399_v42  ;;  %v396_v46 = vunpack.i.h.bf16 %v394_v43  ;;  %v395_v47 = vunpack.i.l.bf16 %v394_v43 }
  0x8b   :  { %302 = vst.msk [vmem:[#allocation0] sm:$0xff] %vm301_vm3, %v395_v47   ;;  %313 = vst.msk [vmem:[#allocation0 + $0x8] sm:$0xff] %vm301_vm3, %v396_v46  }
  0x8c   :  { %323 = vst.msk [vmem:[#allocation0] sm:$0xff] %vm322_vm4, %v400_v45   ;;  %334 = vst.msk [vmem:[#allocation0 + $0x8] sm:$0xff] %vm322_vm4, %v401_v44  }
  0x93   :  { %v339_v48 = vld [vmem:[#allocation0] sm:$0xff]  ;;  %v344_v49 = vld [vmem:[#allocation0 + $0x8] sm:$0xff] }
  0x94   :  { %v382_v50 = vpack.c.bf16 %v344_v49, %v339_v48 }
  0x96   :  { %383 = vst [vmem:[%s441_s1] sm:$0xff] %v382_v50  }

// kernel: conv_subsampling_forward.1
= control target key start
LH: loop header
LB: loop body
LE: loop exit
PB: predicated region body
PF: predicated region fallthrough
CT: control target
= control target key end

     0   :  { %s1499_s0 = inlined_call_operand.vmem [shape: s32[2], index: 0, kind: input, shape index: {}]   ;;  %s1500_s1 = inlined_call_operand.vmem [shape: bf16[2,5,64], index: 1, kind: input, shape index: {}]   ;;  %s1501_s2 = inlined_call_operand.vmem [shape: bf16[2,64,64], index: 2, kind: input, shape index: {}]   ;;  %s1502_s3 = inlined_call_operand.vmem [shape: f32[1,64], index: 3, kind: input, shape index: {}]   ;;  %s1503_s4 = inlined_call_operand.vmem [shape: f32[1,64], index: 4, kind: input, shape index: {}]   ;;  %s1504_s5 = inlined_call_operand.vmem [shape: bf16[3,64,16], index: 5, kind: input, shape index: {}]   ;;  %s1505_s6 = inlined_call_operand.vmem [shape: f32[1,16], index: 6, kind: input, shape index: {}]   ;;  %s1506_s7 = inlined_call_operand.vmem [shape: bf16[16,128], index: 7, kind: input, shape index: {}]   ;;  %s1507_s8 = inlined_call_operand.vmem [shape: f32[1,128], index: 8, kind: input, shape index: {}]   ;;  %s1508_s9 = inlined_call_operand.hbm [shape: f32[2,4,128], index: 9, kind: output, shape index: {}]  }
   0x1   :  { %s14_s11 = sshll.u32 %s1499_s0, 4  ;;  %s15_s11 = int_to_ptr.vmem [resolvable:$true] %s14_s11 }
   0x2   :  { %s1136_s12 = scalar_lea.vmem %s15_s11, 16  ;;  %p1141_p1 = scmp.lt.s32.totalorder %s15_s11, %s15_s11 }
   0x3   :  { %p1137_p0 = scmp.ne.s32.totalorder %s15_s11, %s1136_s12  ;;  %p1142_p2 = scmp.lt.s32.totalorder %s1136_s12, %s1136_s12 }
   0x5   :  { %p1143_p3 = por %p1142_p2, %p1141_p1 }
   0x7   :  { %p1144_p4 = pnand %p1143_p3, %p1137_p0 }
   0x9   :  { %1147 = shalt.err (!%p1144_p4)  }
   0xa   :  { %s1214_s13 = smov [#allocation4]  }
   0xb   :  { %17 = dma.vmem_to_smem %s15_s11, 16, %s1214_s13, [#allocation3] }
   0xc   :  { %1192 = dma.done.wait [#allocation3], 16 }
   0xd   :  { %1193 = vsyncadd [#allocation3], 4294967280 }
   0xe   :  { %19 = sfence }
   0xf   :  { %20 = vsyncpa [#allocation6], 0 }
  0x10   :  { %22 = vsyncpa [#allocation6 + $0x1], 0  ;;  %s1272_s14 = smov 0   ;;  %s1274_s15 = smov 0  }
  0x11   :  { %s1276_s0 = smov 0   ;;  %s1278_s16 = smov 0  }
  0x12 LB: > { %s1293_s17 = sadd.s32 4294967295, %s1212_s16   ;;  %s898_s18 = sadd.s32 4294967294, %s1212_s16   ;;  %s1212_s16 = sphi %s1278_s16, %s1514_s16   ;;  %s1208_s0 = sphi %s1276_s0, %s1513_s0   ;;  %s1204_s15 = sphi %s1274_s15, %s1512_s15   ;;  %s1200_s14 = sphi %s1272_s14, %s1511_s14  }
  0x13   : > { %s1297_s19 = sadd.s32 1, %s1212_s16   ;;  %s208_s20 = sadd.s32 1, %s1208_s0 }
  0x14   : > { %s205_s21 = ssub.s32 %s1212_s16, %s1297_s19  ;;  %p218_p5 = scmp.ne.s32.totalorder %s1208_s0, %s1204_s15 }
  0x15   : > { %p206_p6 = scmp.eq.s32.totalorder %s205_s21, 0  ;;  %p219_p7 = scmp.eq.s32.totalorder %s1293_s17, 1 }
  0x16   : > { %p224_p8 = scmp.ne.s32.totalorder %s1204_s15, %s1200_s14  ;;  %p225_p9 = scmp.eq.s32.totalorder %s898_s18, 1 }
  0x17   : > { %s1308_s22 = scalar_select %p206_p6, %s1208_s0, %s208_s20  }
  0x18   : > { %p1310_p10 = por %p219_p7, %p218_p5  ;;  %p1314_p11 = por %p225_p9, %p224_p8 }
  0x19   : > { %p901_p12 = scmp.ge.s32.totalorder %s1212_s16, 1  ;;  %p271_p13 = scmp.lt.s32.totalorder %s1212_s16, 3 }
  0x1b   : > { %p272_p0 = pnand %p901_p12, %p271_p13 }
  0x1c   : > { %v1106_v0 = vld [vmem:[%s1501_s2 + $0x20] sm:$0xff] (!%p272_p0)   ;;  %v1215_v1 = vmov (!%p272_p0), 0.0   ;;  %v1107_v2 = vld [vmem:[%s1501_s2 + $0x28] sm:$0xff] (!%p272_p0)   ;;  %vm1216_vm0 = vmmov (!%p272_p0), 0   ;;  %p304_p1 = scmp.lt.s32.totalorder (!%p272_p0), %s1293_s17, 1  ;;  %vm361_vm1 = vcmask (!%p272_p0), 523264   ;;  %v494_v33 = vlaneseq (!%p272_p0) }
  0x1d   : > { %275 = sbr.rel (%p272_p0) target bundleno = 821 (0x335), region = 52  ;;  %993 = vmatprep.subr.bf16.mxu0 (!%p272_p0), %v1215_v1  ;;  %1017 = vmatprep.subr.bf16.mxu1 (!%p272_p0), %v1215_v1  ;;  %507 = vst.msk [vmem:[#allocation2] sm:$0xff] (!%p272_p0), %vm361_vm1, %v1215_v1  ;;  %v1108_v3 = vld [vmem:[%s1501_s2 + $0x30] sm:$0xff] (!%p272_p0)   ;;  %v1109_v4 = vld [vmem:[%s1501_s2 + $0x38] sm:$0xff] (!%p272_p0)   ;;  %v1111_v9 = vld [vmem:[%s1501_s2] sm:$0xff] (!%p272_p0)   ;;  %vm508_vm2 = vcmask (!%p272_p0), 519168  }
  0x1e   : > { %994 = vmatpush3.bf16.msra.mxu0 (!%p272_p0), %v1106_v0  ;;  %1001 = vmatprep.mubr.msk.bf16.mxu0 (!%p272_p0), %vm1216_vm0, %v1215_v1  ;;  %v1112_v11 = vld [vmem:[%s1501_s2 + $0x8] sm:$0xff] (!%p272_p0)   ;;  %v1113_v12 = vld [vmem:[%s1501_s2 + $0x10] sm:$0xff] (!%p272_p0)   ;;  %v1114_v13 = vld [vmem:[%s1501_s2 + $0x18] sm:$0xff] (!%p272_p0)   ;;  %509 = vst.msk [vmem:[#allocation2 + $0xc] sm:$0xf] (!%p272_p0), %vm508_vm2, %v1215_v1  ;;  %v497_v34 = vand.u32 (!%p272_p0), 127, %v494_v33 }
  0x1f   : > { %995 = vmatprep.subr.bf16.mxu0 (!%p272_p0), %v1215_v1  ;;  %1025 = vmatprep.mubr.msk.bf16.mxu1 (!%p272_p0), %vm1216_vm0, %v1215_v1  ;;  %v1115_v14 = vld [vmem:[%s1504_s5 + $0x20] sm:$0xff] (!%p272_p0)   ;;  %v1117_v16 = vld [vmem:[%s1504_s5 + $0x28] sm:$0xff] (!%p272_p0)   ;;  %v1119_v18 = vld [vmem:[%s1504_s5 + $0x30] sm:$0xff] (!%p272_p0)   ;;  %v1410_v35 = vshrl.u32 (!%p272_p0), %v494_v33, 7  ;;  %s1413_s27 = sld [smem:[#allocation4 + %s1293_s17]] (!%p272_p0)  ;;  %v1217_v39 = vmov (!%p272_p0), 2  }
  0x20   : > { %v1116_v15 = vld [vmem:[%s1504_s5 + $0x40] sm:$0xff] (!%p272_p0)   ;;  %1018 = vmatpush3.bf16.msra.mxu1 (!%p272_p0), %v1115_v14  ;;  %v1118_v17 = vld [vmem:[%s1504_s5 + $0x48] sm:$0xff] (!%p272_p0)   ;;  %v1120_v19 = vld [vmem:[%s1504_s5 + $0x50] sm:$0xff] (!%p272_p0)   ;;  %vm499_vm3 = vcmp.lt.s32.totalorder (!%p272_p0), %v497_v34, 32  ;;  %vm780_vm6 = vcmask (!%p272_p0), 130048   ;;  %s963_s10 = sshll.u32 (!%p272_p0), %s1293_s17, 6 }
  0x21   : > { %1019 = vmatprep.subr.bf16.mxu1 (!%p272_p0), %v1215_v1  ;;  %v1121_v20 = vld [vmem:[%s1504_s5 + $0x38] sm:$0xff] (!%p272_p0)   ;;  %v923_v22 = vld [vmem:[%s1502_s3] ss:$0 sm:$0xff] (!%p272_p0)  ;;  %v498_v38 = vmul.u32 (!%p272_p0), 4, %v1410_v35  ;;  %v500_v40 = vsel (!%p272_p0), %vm499_vm3, 0, %v1217_v39  ;;  %v1124_v52 = vld [vmem:[%s1504_s5 + $0x8] sm:$0xff] (!%p272_p0)   ;;  %s1457_s20 = scalar_lea.hbm (!%p272_p0), %s1508_s9, %s963_s10 }
  0x22   : > { %996 = vmatpush3.bf16.msra.mxu0 (!%p272_p0), %v1107_v2  ;;  %v1122_v21 = vld [vmem:[%s1504_s5 + $0x58] sm:$0xff] (!%p272_p0)   ;;  %v924_v24 = vld [vmem:[%s1503_s4] ss:$0 sm:$0xff] (!%p272_p0)  ;;  %v1125_v53 = vld [vmem:[%s1504_s5 + $0x10] sm:$0xff] (!%p272_p0)   ;;  %s1218_s25 = smov (!%p272_p0), [#allocation5]  }
  0x23   : > { %997 = vmatprep.subr.bf16.mxu0 (!%p272_p0), %v1215_v1  ;;  %v501_v41 = vadd.s32 (!%p272_p0), %v500_v40, %v498_v38  ;;  %v1123_v48 = vld [vmem:[%s1504_s5] sm:$0xff] (!%p272_p0)   ;;  %v1126_v54 = vld [vmem:[%s1504_s5 + $0x18] sm:$0xff] (!%p272_p0)   ;;  %s1152_s26 = sshll.u32 (!%p272_p0), %s1218_s25, 4  ;;  %s1153_s26 = int_to_ptr.vmem [resolvable:$false] %s1152_s26 }
  0x24   : > { %s305_s29 = scalar_select %p304_p1, %s1293_s17, 1  ;;  %1020 = vmatpush3.bf16.msra.mxu1 %v1117_v16  ;;  %v1127_v57 = vld [vmem:[%s1506_s7] sm:$0xff]  }
  0x25   : > { %1021 = vmatprep.subr.bf16.mxu1 %v1215_v1  ;;  %v502_v42 = vstv %s1413_s27  ;;  %s301_s27 = sand.u32 1, %s1204_s15  }
  0x26   : > { %s903_s11 = sshll.u32 %s305_s29, 2  ;;  %998 = vmatpush3.bf16.msra.mxu0 %v1108_v3  ;;  %vm503_vm4 = vcmp.lt.s32.totalorder %v501_v41, %v502_v42  ;;  %vm760_vm5 = vcmp.lt.s32.totalorder %v498_v38, %v502_v42  ;;  %s902_s28 = sshll.u32 %s301_s27, 2 }
  0x27   : > { %s307_s18 = scalar_lea.vmem %s1500_s1, %s903_s11  ;;  %999 = vmatprep.subr.bf16.mxu0 %v1215_v1  ;;  %v925_v44 = vsel %vm503_vm4, 1.0, %v1215_v1  ;;  %s303_s11 = scalar_lea.vmem [#allocation5], %s902_s28 }
  0x28   : > { %v1110_v5 = vld [vmem:[%s307_s18] ss:$0 sps:$4 sm:$0x77]   ;;  %1022 = vmatpush3.bf16.msra.mxu1 %v1119_v18  ;;  %s839_s12 = sshll.u32 %s303_s11, 4  ;;  %s826_s21 = scalar_lea.sflag [#allocation6], %s301_s27  ;;  %s1459_s12 = int_to_ptr.vmem [resolvable:$true] %s839_s12 }
  0x29   : > { %v331_v6 = vshrl.u32 %v1110_v5, 16  ;;  %v333_v7 = vshll.u32 %v1110_v5, 16  ;;  %1023 = vmatprep.subr.bf16.mxu1 %v1215_v1  ;;  %s1148_s17 = scalar_lea.vmem %s1459_s12, 64  ;;  %s1154_s28 = scalar_lea.vmem %s1153_s26, 128 }
  0x2a   : > { %1000 = vmatpush3.bf16.msra.mxu0 %v1109_v4  ;;  %p1149_p2 = scmp.ne.s32.totalorder %s1459_s12, %s1148_s17  ;;  %p1155_p5 = scmp.lt.s32.totalorder %s1459_s12, %s1153_s26 }
  0x2b   : > { %v335_v8 = vrot.slane %v333_v7, 1  ;;  %1005 = vmatprep.subr.bf16.mxu0 %v1215_v1  ;;  %p1156_p6 = scmp.lt.s32.totalorder %s1154_s28, %s1148_s17 }
  0x2c   : > { %1024 = vmatpush3.bf16.msra.mxu1 %v1121_v20  ;;  %p1150_p3 = pnand %p1149_p2, %p1310_p10 }
  0x2d   : > { %v336_v10 = vor.u32 %v335_v8, %v331_v6  ;;  %1029 = vmatprep.subr.bf16.mxu1 %v1215_v1  ;;  %v957_v6 = vld [vmem:[%s1505_s6] ss:$0 sm:$0xff]  ;;  %p1157_p7 = por %p1156_p6, %p1155_p5 }
  0x2e   : > { %p1151_p4 = pneg %p1150_p3 }
  0x2f   : > { %1002 = vmatmul.mubr.msk.bf16.vlgmr.msra.gmra.mrb[0].mxu0 %vm361_vm1, %v336_v10 }
  0x30   : > { %1006 = vmatpush3.bf16.msra.mxu0 %v1111_v9  ;;  %1013 = vmatprep.mubr.msk.bf16.mxu0 %vm1216_vm0, %v1215_v1  ;;  %p1158_p8 = pnand %p1157_p7, %p1151_p4 }
  0x31   : > { %1007 = vmatprep.subr.bf16.mxu0 %v1215_v1 }
  0x34   : > { %1008 = vmatpush3.bf16.msra.mxu0 %v1112_v11 }
  0x35   : > { %1009 = vmatprep.subr.bf16.mxu0 %v1215_v1 }
  0x38   : > { %1010 = vmatpush3.bf16.msra.mxu0 %v1113_v12 }
  0x39   : > { %1011 = vmatprep.subr.bf16.mxu0 %v1215_v1 }
  0x3c   : > { %1012 = vmatpush3.bf16.msra.mxu0 %v1114_v13 }
  0x3d   : > { %1041 = vmatprep.subr.bf16.mxu0 %v1215_v1 }
  0x3f   : > { %1014 = vmatmul.mubr.msk.bf16.vlgmr.msra.gmra.mrb[0].mxu0 %vm361_vm1, %v1110_v5 }
  0x40   : > { %1049 = vmatprep.mubr.msk.bf16.mxu0 %vm1216_vm0, %v1215_v1  ;;  %1042 = vmatpush3.bf16.msra.mxu0 %v1116_v15 }
  0x41   : > { %1043 = vmatprep.subr.bf16.mxu0 %v1215_v1 }
  0x44   : > { %1044 = vmatpush3.bf16.msra.mxu0 %v1118_v17  ;;  %v958_v17 = vsel %vm760_vm5, 1.0, %v1215_v1 }
  0x45   : > { %1045 = vmatprep.subr.bf16.mxu0 %v1215_v1 }
  0x48   : > { %1046 = vmatpush3.bf16.msra.mxu0 %v1120_v19 }
  0x49   : > { %1047 = vmatprep.subr.bf16.mxu0 %v1215_v1 }
  0x4c   : > { %1048 = vmatpush3.bf16.msra.mxu0 %v1122_v21  ;;  %v959_v21 = vld [vmem:[%s1507_s8] ss:$0 sm:$0xff] }
 0x112   : > { %v465_v23 = vpop.f32.mrb[0].mxu0 }
 0x113   : > { %v478_v25 = vmul.f32 %v923_v22, %v465_v23  ;;  %v1015_v26 = vpop.f32.mrb[1].mxu0 }
 0x114   : > { %v468_v27 = vpop.f32.mrb[2].mxu0 }
 0x115   : > { %v486_v28 = vadd.f32 %v924_v24, %v478_v25  ;;  %v1016_v29 = vpop.f32.mrb[3].mxu0 }
 0x117   : > { %v487_v30 = vmax.f32 %v486_v28, -60.0 }
 0x119   : > { %v488_v31 = vsub.f32 0.0, %v487_v30 }
 0x11b   : > { %v489_v32 = vmul.f32 1.442695, %v488_v31 }
 0x11d   : > { %1128 = vpow2.f32 %v489_v32 }
 0x127   : > { %v1129_v36 = vpop.eup %1128 }
 0x128   : > { %v491_v37 = vadd.f32 1.0, %v1129_v36 }
 0x12a   : > { %1130 = vrcp.f32 %v491_v37 }
 0x134   : > { %v1131_v43 = vpop.eup %1130 }
 0x135   : > { %v493_v45 = vmul.f32 %v1131_v43, %v486_v28 }
 0x137   : > { %v506_v46 = vmul.f32 %v925_v44, %v493_v45 }
 0x139   : > { %510 = vst.msk [vmem:[#allocation2 + $0x8] sm:$0xf] %vm508_vm2, %v506_v46 }
 0x140   : > { %v513_v47 = vld [vmem:[#allocation2 + $0x8] sm:$0xf] }
 0x141   : > { %v515_v49 = vld [vmem:[#allocation2 + $0x9] sm:$0xf]  ;;  %v514_v50 = vpack.c.bf16 %v513_v47, %v513_v47 }
 0x142   : > { %v516_v51 = vpack.c.bf16 %v515_v49, %v515_v49  ;;  %v511_v55 = vld [vmem:[#allocation2 + $0x7] sm:$0xf] }
 0x143   : > { %1026 = vmatmul.mubr.msk.bf16.vlgmr.msra.gmra.mrb[0].mxu1 %vm361_vm1, %v514_v50  ;;  %v512_v56 = vpack.c.bf16 %v511_v55, %v511_v55 }
 0x144   : > { %1050 = vmatmul.mubr.msk.bf16.vlgmr.msra.gmra.mrb[4].mxu0 %vm361_vm1, %v516_v51  ;;  %1030 = vmatpush3.bf16.msra.mxu1 %v1123_v48 }
 0x145   : > { %1037 = vmatprep.mubr.msk.bf16.mxu1 %vm1216_vm0, %v1215_v1  ;;  %1031 = vmatprep.subr.bf16.mxu1 %v1215_v1 }
 0x148   : > { %1032 = vmatpush3.bf16.msra.mxu1 %v1124_v52 }
 0x149   : > { %1033 = vmatprep.subr.bf16.mxu1 %v1215_v1 }
 0x14c   : > { %1034 = vmatpush3.bf16.msra.mxu1 %v1125_v53 }
 0x14d   : > { %1035 = vmatprep.subr.bf16.mxu1 %v1215_v1 }
 0x150   : > { %1036 = vmatpush3.bf16.msra.mxu1 %v1126_v54 }
 0x151   : > { %1053 = vmatprep.subr.bf16.mxu1 %v1215_v1 }
 0x153   : > { %1038 = vmatmul.mubr.msk.bf16.vlgmr.msra.gmra.mrb[4].mxu1 %vm361_vm1, %v512_v56 }
 0x154   : > { %1055 = vmatprep.mubr.msk.bf16.mxu1 %vm1216_vm0, %v1215_v1  ;;  %1054 = vmatpush3.bf16.msra.mxu1 %v1127_v57 }
 0x216   : > { %v595_v58 = vpop.f32.mrb[0].mxu1 }
 0x217   : > { %v738_v59 = vpop.f32.mrb[4].mxu0  ;;  %v1027_v60 = vpop.f32.mrb[1].mxu1 }
 0x218   : > { %v1051_v61 = vpop.f32.mrb[5].mxu0  ;;  %v598_v62 = vpop.f32.mrb[2].mxu1 }
 0x219   : > { %v741_v63 = vpop.f32.mrb[6].mxu0  ;;  %v1028_v0 = vpop.f32.mrb[3].mxu1 }
 0x21a   : > { %v1052_v2 = vpop.f32.mrb[7].mxu0 }
 0x226   : > { %v662_v3 = vpop.f32.mrb[4].mxu1 }
 0x227   : > { %v663_v4 = vadd.f32 %v662_v3, %v595_v58  ;;  %v1039_v5 = vpop.f32.mrb[5].mxu1 }
 0x228   : > { %v665_v7 = vpop.f32.mrb[6].mxu1 }
 0x229   : > { %v744_v8 = vadd.f32 %v738_v59, %v663_v4  ;;  %v1040_v9 = vpop.f32.mrb[7].mxu1 }
 0x22b   : > { %v752_v10 = vadd.f32 %v957_v6, %v744_v8 }
 0x22d   : > { %v753_v11 = vmax.f32 %v752_v10, -60.0 }
 0x22f   : > { %v754_v12 = vsub.f32 0.0, %v753_v11 }
 0x231   : > { %v755_v13 = vmul.f32 1.442695, %v754_v12 }
 0x233   : > { %1132 = vpow2.f32 %v755_v13 }
 0x23d   : > { %v1133_v14 = vpop.eup %1132 }
 0x23e   : > { %v757_v15 = vadd.f32 1.0, %v1133_v14 }
 0x240   : > { %1134 = vrcp.f32 %v757_v15 }
 0x24a   : > { %v1135_v16 = vpop.eup %1134 }
 0x24b   : > { %v759_v18 = vmul.f32 %v1135_v16, %v752_v10 }
 0x24d   : > { %v763_v19 = vmul.f32 %v958_v17, %v759_v18 }
 0x24f   : > { %v764_v20 = vpack.c.bf16 %v763_v19, %v763_v19 }
 0x251   : > { %1056 = vmatmul.mubr.msk.bf16.vlgmr.msra.gmra.mrb[8].mxu1 %vm780_vm6, %v764_v20 }
 0x324   : > { %v818_v22 = vpop.f32.mrb[8].mxu1 }
 0x325   : > { %v819_v23 = vadd.f32 %v959_v21, %v818_v22  ;;  %v1057_v24 = vpop.f32.mrb[9].mxu1 }
 0x326   : > { %v821_v1 = vpop.f32.mrb[10].mxu1 }
 0x327   : > { %824 = vst [vmem:[%s303_s11] sm:$0xf] %v819_v23  ;;  %v1058_v25 = vpop.f32.mrb[11].mxu1 }
 0x328   : > { %1161 = shalt.err (!%p1158_p8)
}
 0x329   : > { %s1162_s27 = scalar_lea.hbm %s1457_s20, 64  ;;  %s1166_s10 = scalar_lea.hbm %s1508_s9, 128 }
 0x32a   : > { %p1163_p9 = scmp.ne.s32.totalorder %s1457_s20, %s1162_s27  ;;  %p1167_p0 = scmp.lt.u32.totalorder %s1457_s20, %s1508_s9 }
 0x32b   : > { %p1168_p1 = scmp.lt.u32.totalorder %s1166_s10, %s1162_s27  ;;  %p1170_p3 = scmp.lt.u32.totalorder %s1162_s27, %s1457_s20 }
 0x32c   : > { %p1164_p12 = pnand %p1163_p9, %p1310_p10 }
 0x32d   : > { %p1169_p2 = por %p1168_p1, %p1167_p0 }
 0x32e   : > { %p1165_p13 = pneg %p1164_p12 }
 0x32f   : > { %p1171_p4 = por %p1170_p3, %p1169_p2 }
 0x331   : > { %p1172_p5 = pnand %p1171_p4, %p1165_p13 }
 0x333   : > { %1175 = shalt.err (!%p1172_p5)
}
 0x334   : > { %1063 = dma.vmem_to_hbm [thread:$0]  (%p1310_p10), %s1459_s12, 64, %s1457_s20, %s826_s21  }
 0x335 PF: > { %p1069_p6 = scmp.ge.s32.totalorder %s1212_s16, 2  ;;  %s851_s18 = sand.u32 1, %s1200_s14  }
 0x336   : > { %s852_s17 = scalar_lea.sflag [#allocation6], %s851_s18 }
 0x337   : > { %p1066_p7 = pnand %p1069_p6, %p1314_p11 }
 0x339   : > { %1195 = dma.done.wait (!%p1066_p7), %s852_s17, 64  }
 0x33a   : > { %1197 = vsyncadd (!%p1066_p7), %s852_s17, 4294967232  ;;  %p25_p8 = scmp.ge.s32.totalorder %s1297_s19, 4   ;;  %s1511_s14 = smov %s1204_s15 }
 0x33b   : > { %s1512_s15 = smov %s1208_s0  ;;  %s1513_s0 = smov %s1308_s22 }
 0x33c   : > { %s1514_s16 = smov %s1297_s19  ;;  %27 = sbr.rel (!%p25_p8) target bundleno = 18 (0x12), region = 90 }
 0x343   :  { %857 = vsyncpa [#allocation6], 1 }
 0x344   :  { %859 = vsyncpa [#allocation6 + $0x1], 1 }

</bundles_post_ra>
